<compile_context>
chip_gen: v7x
topology: tpu7x:2x2x1
jax: 0.10.0
libtpu: 0.0.40
codegen_flags: <defaults>
</compile_context>

<pallas_src>
import math
import functools

import jax
import jax.numpy as jnp
from jax import lax
from jax.experimental import pallas as pl
from jax.experimental.pallas import tpu as pltpu


# ---------------------------------------------------------------------------
# Kernel 1: fused Q/K/V input projections over (B*S) row tiles.
# ---------------------------------------------------------------------------
def _qkv_proj_kernel(xq_ref, xk_ref, xv_ref,
                     wq_ref, wk_ref, wv_ref,
                     bq_ref, bk_ref, bv_ref,
                     qp_ref, kp_ref, vp_ref):
    # bf16 MXU operands, f32 accumulation; bias add stays f32.
    xq = xq_ref[...].astype(jnp.bfloat16)
    xk = xk_ref[...].astype(jnp.bfloat16)
    xv = xv_ref[...].astype(jnp.bfloat16)

    # 1/sqrt(d_k) is already folded into wq/bq in the wrapper.
    qp_ref[...] = (jnp.dot(xq, wq_ref[...], preferred_element_type=jnp.float32)
                   + bq_ref[...]).astype(qp_ref.dtype)
    kp_ref[...] = (jnp.dot(xk, wk_ref[...], preferred_element_type=jnp.float32)
                   + bk_ref[...]).astype(kp_ref.dtype)
    vp_ref[...] = (jnp.dot(xv, wv_ref[...], preferred_element_type=jnp.float32)
                   + bv_ref[...]).astype(vp_ref.dtype)


# ---------------------------------------------------------------------------
# Kernel 2: flash attention (online softmax) on head-major (B*H, S, d_k).
#   grid = (B*H, S//tq, S//tkv); kv axis is the reduction axis ("arbitrary").
# ---------------------------------------------------------------------------
def _flash_attn_kernel(q_ref, k_ref, v_ref, o_ref, m_sc, l_sc, acc_sc):
    ki = pl.program_id(2)

    @pl.when(ki == 0)
    def _():
        m_sc[...] = jnp.full_like(m_sc, -jnp.inf)
        l_sc[...] = jnp.zeros_like(l_sc)
        acc_sc[...] = jnp.zeros_like(acc_sc)

    q = q_ref[0]      # (tq,  d_k) bf16, pre-scaled by 1/sqrt(d_k)
    k = k_ref[0]      # (tkv, d_k) bf16
    v = v_ref[0]      # (tkv, d_k) bf16

    # Contract last dims -> q @ k^T with no explicit (XLU) transpose.
    dn = (((1,), (1,)), ((), ()))
    s = lax.dot_general(q, k, dn, preferred_element_type=jnp.float32)  # (tq, tkv)

    m_prev = m_sc[...]                                                  # (tq, 1)
    m_new = jnp.maximum(m_prev, jnp.max(s, axis=-1, keepdims=True))
    alpha = jnp.exp(m_prev - m_new)                                     # f32, tiny

    # bf16 exp halves EUP work on v6e/v7x (the binding unit at d_k<=128); p is
    # a bf16 MXU operand anyway.  On v5e this goes through the f32 EUP path
    # (still correct).  The running denominator accumulates in f32.
    p = jnp.exp((s - m_new).astype(jnp.bfloat16))                       # (tq, tkv)

    l_sc[...] = alpha * l_sc[...] + jnp.sum(p, axis=-1, keepdims=True,
                                            dtype=jnp.float32)
    acc_sc[...] = alpha * acc_sc[...] + jnp.dot(
        p, v, preferred_element_type=jnp.float32)
    m_sc[...] = m_new

    # TODO(synk): attention-prob dropout and the optional mask from the
    # PyTorch module are omitted (eval / mask=None path).

    @pl.when(ki == pl.num_programs(2) - 1)
    def _():
        inv_l = pl.reciprocal(l_sc[...], approx=True)                   # EUP slot
        o_ref[0] = (acc_sc[...] * inv_l).astype(o_ref.dtype)


# ---------------------------------------------------------------------------
# Kernel 3: output projection over (B*S) row tiles (full-depth D matmul).
# ---------------------------------------------------------------------------
def _out_proj_kernel(x_ref, w_ref, b_ref, o_ref):
    o_ref[...] = (jnp.dot(x_ref[...], w_ref[...],
                          preferred_element_type=jnp.float32)
                  + b_ref[...]).astype(o_ref.dtype)


# ---------------------------------------------------------------------------
# Wrapper
# ---------------------------------------------------------------------------
def multi_head_attention(q, k, v, params, *, heads, tm=512, tq=256, tkv=256):
    """q, k, v: (B, S, D) float32.  params: dict of weights/biases (f32)."""
    B, S, D = q.shape
    assert D % heads == 0, "d_model must divide by heads"
    d_k = D // heads
    scale = 1.0 / math.sqrt(d_k)
    f32, bf16 = jnp.float32, jnp.bfloat16

    # Weights become bf16 MXU operands once; the attention scale is folded
    # into the Q projection weight/bias here (free: already touching them).
    wq = (params["wq"] * scale).astype(bf16)
    wk = params["wk"].astype(bf16)
    wv = params["wv"].astype(bf16)
    wo = params["wo"].astype(bf16)
    bq = (params["bq"] * scale).astype(f32)
    bk = params["bk"].astype(f32)
    bv = params["bv"].astype(f32)
    bo = params["bo"].astype(f32)

    # 32 MiB scoped VMEM is safe on v5e/v6e and on v7x (64 MiB physical).
    vmem_limit = 32 * 1024 * 1024
    # TODO(synk): for D >= 2048 the fully-resident (D, D) weights overrun the
    # v7x budget; block them along K/N with an extra grid axis.

    # ---------------- fused Q/K/V projections over (B*S) rows ---------------
    BS = B * S
    tm = min(tm, BS)                      # sublane-dense row blocks

    row_x_spec = pl.BlockSpec((tm, D), lambda i: (i, 0))
    row_o_spec = pl.BlockSpec((tm, D), lambda i: (i, 0))
    # Constant-index weight/bias blocks: single-buffer (double-buffering a
    # constant block only burns VMEM headroom).
    w_spec = pl.BlockSpec((D, D), lambda i: (0, 0), pipeline_mode=pl.Buffered(1))
    b_spec = pl.BlockSpec((1, D), lambda i: (0, 0), pipeline_mode=pl.Buffered(1))

    proj_cost = pl.CostEstimate(
        flops=int(3 * 2 * BS * D * D),
        transcendentals=0,
        bytes_accessed=int(3 * BS * D * 4 + 3 * D * D * 2 + 3 * D * 4
                           + 3 * BS * D * 2),
    )

    qp, kp, vp = pl.pallas_call(
        _qkv_proj_kernel,
        out_shape=(jax.ShapeDtypeStruct((BS, D), bf16),) * 3,
        grid_spec=pltpu.PrefetchScalarGridSpec(
            num_scalar_prefetch=0,
            grid=(pl.cdiv(BS, tm),),
            in_specs=[row_x_spec] * 3 + [w_spec] * 3 + [b_spec] * 3,
            out_specs=[row_o_spec] * 3,
        ),
        compiler_params=pltpu.CompilerParams(
            dimension_semantics=("parallel",),
            vmem_limit_bytes=vmem_limit),
        cost_estimate=proj_cost,
    )(q.reshape(BS, D), k.reshape(BS, D), v.reshape(BS, D),
      wq, wk, wv, bq, bk, bv)

    # Head-major layout (B*heads, S, d_k): heads become a parallel grid axis,
    # so the attention kernel never lane-slices at d_k granularity and the
    # scratch is per-head sized.  Wrapper-side transpose is layout plumbing.
    # TODO(synk): when d_k % 128 == 0 this transpose can be skipped by letting
    # the BlockSpec slice the D axis directly at d_k granularity.
    def to_head_major(x):
        return (x.reshape(B, S, heads, d_k)
                 .transpose(0, 2, 1, 3)
                 .reshape(B * heads, S, d_k))

    qh, kh, vh = to_head_major(qp), to_head_major(kp), to_head_major(vp)

    # ---------------- flash attention -----------------------------------
    tq = min(tq, S)
    tkv = min(tkv, S)
    # TODO(synk): non-divisible S needs explicit remainder-tile masking.
    assert S % tq == 0 and S % tkv == 0, "S must divide by the seq tile sizes"

    q_spec = pl.BlockSpec((1, tq, d_k), lambda bh, qi, ki: (bh, qi, 0))
    kv_spec = pl.BlockSpec((1, tkv, d_k), lambda bh, qi, ki: (bh, ki, 0))
    o_spec = pl.BlockSpec((1, tq, d_k), lambda bh, qi, ki: (bh, qi, 0))

    attn_cost = pl.CostEstimate(
        flops=int(4 * B * S * S * D),                 # QK^T and PV matmuls
        transcendentals=int(B * heads * S * S),       # one exp per score
        bytes_accessed=int(B * S * D * 2 * (2 + 2 * (S // tq))),
    )

    attn = pl.pallas_call(
        _flash_attn_kernel,
        out_shape=jax.ShapeDtypeStruct((B * heads, S, d_k), bf16),
        grid_spec=pltpu.PrefetchScalarGridSpec(
            num_scalar_prefetch=0,
            grid=(B * heads, S // tq, S // tkv),
            in_specs=[q_spec, kv_spec, kv_spec],
            out_specs=o_spec,
            scratch_shapes=[
                pltpu.VMEM((tq, 1), f32),     # running max
                pltpu.VMEM((tq, 1), f32),     # running denominator
                pltpu.VMEM((tq, d_k), f32),   # unnormalized accumulator
            ]),
        compiler_params=pltpu.CompilerParams(
            dimension_semantics=("parallel", "parallel", "arbitrary"),
            vmem_limit_bytes=vmem_limit),
        cost_estimate=attn_cost,
    )(qh, kh, vh)

    # ---------------- head concat + output projection -----------------------
    concat = (attn.reshape(B, heads, S, d_k)
                  .transpose(0, 2, 1, 3)
                  .reshape(BS, D))

    out_cost = pl.CostEstimate(
        flops=int(2 * BS * D * D),
        transcendentals=0,
        bytes_accessed=int(BS * D * 2 + D * D * 2 + D * 4 + BS * D * 4),
    )

    out = pl.pallas_call(
        _out_proj_kernel,
        out_shape=jax.ShapeDtypeStruct((BS, D), q.dtype),
        grid_spec=pltpu.PrefetchScalarGridSpec(
            num_scalar_prefetch=0,
            grid=(pl.cdiv(BS, tm),),
            in_specs=[row_x_spec, w_spec, b_spec],
            out_specs=row_o_spec,
        ),
        compiler_params=pltpu.CompilerParams(
            dimension_semantics=("parallel",),
            vmem_limit_bytes=vmem_limit),
        cost_estimate=out_cost,
    )(concat, wo, bo)

    return out.reshape(B, S, D)


# ---------------------------------------------------------------------------
# Plain-JAX reference (f32) matching the PyTorch forward (mask=None, eval).
# ---------------------------------------------------------------------------
def _reference(q, k, v, params, *, heads):
    B, S, D = q.shape
    d_k = D // heads

    def lin(x, w, b):
        return x @ w + b

    qp = lin(q, params["wq"], params["bq"]).reshape(B, S, heads, d_k).transpose(0, 2, 1, 3)
    kp = lin(k, params["wk"], params["bk"]).reshape(B, S, heads, d_k).transpose(0, 2, 1, 3)
    vp = lin(v, params["wv"], params["bv"]).reshape(B, S, heads, d_k).transpose(0, 2, 1, 3)

    scores = jnp.einsum("bhqd,bhkd->bhqk", qp, kp) / math.sqrt(d_k)
    probs = jax.nn.softmax(scores, axis=-1)
    out = jnp.einsum("bhqk,bhkd->bhqd", probs, vp)
    concat = out.transpose(0, 2, 1, 3).reshape(B, S, D)
    return lin(concat, params["wo"], params["bo"])


if __name__ == "__main__":
    B, S, D, HEADS = 2, 8, 32, 4

    key = jax.random.PRNGKey(0)
    keys = jax.random.split(key, 12)

    scale = 1.0 / math.sqrt(D)
    params = {
        "wq": jax.random.uniform(keys[0], (D, D), jnp.float32, -scale, scale),
        "wk": jax.random.uniform(keys[1], (D, D), jnp.float32, -scale, scale),
        "wv": jax.random.uniform(keys[2], (D, D), jnp.float32, -scale, scale),
        "wo": jax.random.uniform(keys[3], (D, D), jnp.float32, -scale, scale),
        "bq": jax.random.uniform(keys[4], (1, D), jnp.float32, -scale, scale),
        "bk": jax.random.uniform(keys[5], (1, D), jnp.float32, -scale, scale),
        "bv": jax.random.uniform(keys[6], (1, D), jnp.float32, -scale, scale),
        "bo": jax.random.uniform(keys[7], (1, D), jnp.float32, -scale, scale),
    }

    q = jax.random.normal(keys[8], (B, S, D), jnp.float32)
    k = jax.random.normal(keys[9], (B, S, D), jnp.float32)
    v = jax.random.normal(keys[10], (B, S, D), jnp.float32)

    out = multi_head_attention(q, k, v, params, heads=HEADS)
    out = jax.block_until_ready(out)

    ref = _reference(q, k, v, params, heads=HEADS)
    assert out.shape == (B, S, D)
    # bf16 matmul operands / bf16 exp with f32 accumulation -> relaxed
    # tolerance vs the f32 reference.
    assert jnp.allclose(out, ref, atol=5e-2, rtol=5e-2), "mismatch vs reference"

    print("KERNEL_OK")
</pallas_src>

<mosaic_0001>
module attributes {stable_mosaic.version = 11 : i64} {
  func.func @_qkv_proj_kernel(%arg0: i32, %arg1: memref<16x32xf32, #tpu.memory_space<vmem>>, %arg2: memref<16x32xf32, #tpu.memory_space<vmem>>, %arg3: memref<16x32xf32, #tpu.memory_space<vmem>>, %arg4: memref<32x32xbf16, #tpu.memory_space<vmem>>, %arg5: memref<32x32xbf16, #tpu.memory_space<vmem>>, %arg6: memref<32x32xbf16, #tpu.memory_space<vmem>>, %arg7: memref<1x32xf32, #tpu.memory_space<vmem>>, %arg8: memref<1x32xf32, #tpu.memory_space<vmem>>, %arg9: memref<1x32xf32, #tpu.memory_space<vmem>>, %arg10: memref<16x32xbf16, #tpu.memory_space<vmem>>, %arg11: memref<16x32xbf16, #tpu.memory_space<vmem>>, %arg12: memref<16x32xbf16, #tpu.memory_space<vmem>>) attributes {dimension_semantics = [#tpu.dimension_semantics<parallel>], iteration_bounds = array<i64: 1>, scalar_prefetch = 0 : i64, scratch_operands = 0 : i64, tpu.core_type = #tpu.core_type<tc>, window_params = [{transform_indices = @transform_0, window_bounds = array<i64: 16, 32>}, {transform_indices = @transform_1, window_bounds = array<i64: 16, 32>}, {transform_indices = @transform_2, window_bounds = array<i64: 16, 32>}, {pipeline_mode = #tpu.pipeline_mode<synchronous>, transform_indices = @transform_3, window_bounds = array<i64: 32, 32>}, {pipeline_mode = #tpu.pipeline_mode<synchronous>, transform_indices = @transform_4, window_bounds = array<i64: 32, 32>}, {pipeline_mode = #tpu.pipeline_mode<synchronous>, transform_indices = @transform_5, window_bounds = array<i64: 32, 32>}, {pipeline_mode = #tpu.pipeline_mode<synchronous>, transform_indices = @transform_6, window_bounds = array<i64: 1, 32>}, {pipeline_mode = #tpu.pipeline_mode<synchronous>, transform_indices = @transform_7, window_bounds = array<i64: 1, 32>}, {pipeline_mode = #tpu.pipeline_mode<synchronous>, transform_indices = @transform_8, window_bounds = array<i64: 1, 32>}, {transform_indices = @transform_9, window_bounds = array<i64: 16, 32>}, {transform_indices = @transform_10, window_bounds = array<i64: 16, 32>}, {transform_indices = @transform_11, window_bounds = array<i64: 16, 32>}]} {
    %c0 = arith.constant 0 : index
    %c0_0 = arith.constant 0 : index
    %0 = vector.load %arg1[%c0, %c0_0] : memref<16x32xf32, #tpu.memory_space<vmem>>, vector<16x32xf32>
    %1 = arith.truncf %0 : vector<16x32xf32> to vector<16x32xbf16>
    %c0_1 = arith.constant 0 : index
    %c0_2 = arith.constant 0 : index
    %2 = vector.load %arg2[%c0_1, %c0_2] : memref<16x32xf32, #tpu.memory_space<vmem>>, vector<16x32xf32>
    %3 = arith.truncf %2 : vector<16x32xf32> to vector<16x32xbf16>
    %c0_3 = arith.constant 0 : index
    %c0_4 = arith.constant 0 : index
    %4 = vector.load %arg3[%c0_3, %c0_4] : memref<16x32xf32, #tpu.memory_space<vmem>>, vector<16x32xf32>
    %5 = arith.truncf %4 : vector<16x32xf32> to vector<16x32xbf16>
    %c0_5 = arith.constant 0 : index
    %c0_6 = arith.constant 0 : index
    %6 = vector.load %arg4[%c0_5, %c0_6] : memref<32x32xbf16, #tpu.memory_space<vmem>>, vector<32x32xbf16>
    %cst = arith.constant dense<0.000000e+00> : vector<16x32xf32>
    %7 = tpu.matmul %1, %6, %cst {dimension_numbers = #tpu.dot_dimension_numbers<[1], [0], [0], [1], [0, 0, 1, 1], [], []>} : vector<16x32xbf16>, vector<32x32xbf16>, vector<16x32xf32> -> vector<16x32xf32>
    %c0_7 = arith.constant 0 : index
    %c0_8 = arith.constant 0 : index
    %8 = vector.load %arg7[%c0_7, %c0_8] : memref<1x32xf32, #tpu.memory_space<vmem>>, vector<1x32xf32>
    %9 = vector.broadcast %8 : vector<1x32xf32> to vector<16x32xf32>
    %10 = arith.addf %7, %9 : vector<16x32xf32>
    %11 = arith.truncf %10 : vector<16x32xf32> to vector<16x32xbf16>
    %c0_9 = arith.constant 0 : index
    %c0_10 = arith.constant 0 : index
    %12 = vector.load %arg10[%c0_9, %c0_10] : memref<16x32xbf16, #tpu.memory_space<vmem>>, vector<16x32xbf16>
    tpu.vector_store %arg10[%c0_9, %c0_10], %11 {strides = array<i32>} : memref<16x32xbf16, #tpu.memory_space<vmem>>, vector<16x32xbf16>,
    %c0_11 = arith.constant 0 : index
    %c0_12 = arith.constant 0 : index
    %13 = vector.load %arg5[%c0_11, %c0_12] : memref<32x32xbf16, #tpu.memory_space<vmem>>, vector<32x32xbf16>
    %cst_13 = arith.constant dense<0.000000e+00> : vector<16x32xf32>
    %14 = tpu.matmul %3, %13, %cst_13 {dimension_numbers = #tpu.dot_dimension_numbers<[1], [0], [0], [1], [0, 0, 1, 1], [], []>} : vector<16x32xbf16>, vector<32x32xbf16>, vector<16x32xf32> -> vector<16x32xf32>
    %c0_14 = arith.constant 0 : index
    %c0_15 = arith.constant 0 : index
    %15 = vector.load %arg8[%c0_14, %c0_15] : memref<1x32xf32, #tpu.memory_space<vmem>>, vector<1x32xf32>
    %16 = vector.broadcast %15 : vector<1x32xf32> to vector<16x32xf32>
    %17 = arith.addf %14, %16 : vector<16x32xf32>
    %18 = arith.truncf %17 : vector<16x32xf32> to vector<16x32xbf16>
    %c0_16 = arith.constant 0 : index
    %c0_17 = arith.constant 0 : index
    %19 = vector.load %arg11[%c0_16, %c0_17] : memref<16x32xbf16, #tpu.memory_space<vmem>>, vector<16x32xbf16>
    tpu.vector_store %arg11[%c0_16, %c0_17], %18 {strides = array<i32>} : memref<16x32xbf16, #tpu.memory_space<vmem>>, vector<16x32xbf16>,
    %c0_18 = arith.constant 0 : index
    %c0_19 = arith.constant 0 : index
    %20 = vector.load %arg6[%c0_18, %c0_19] : memref<32x32xbf16, #tpu.memory_space<vmem>>, vector<32x32xbf16>
    %cst_20 = arith.constant dense<0.000000e+00> : vector<16x32xf32>
    %21 = tpu.matmul %5, %20, %cst_20 {dimension_numbers = #tpu.dot_dimension_numbers<[1], [0], [0], [1], [0, 0, 1, 1], [], []>} : vector<16x32xbf16>, vector<32x32xbf16>, vector<16x32xf32> -> vector<16x32xf32>
    %c0_21 = arith.constant 0 : index
    %c0_22 = arith.constant 0 : index
    %22 = vector.load %arg9[%c0_21, %c0_22] : memref<1x32xf32, #tpu.memory_space<vmem>>, vector<1x32xf32>
    %23 = vector.broadcast %22 : vector<1x32xf32> to vector<16x32xf32>
    %24 = arith.addf %21, %23 : vector<16x32xf32>
    %25 = arith.truncf %24 : vector<16x32xf32> to vector<16x32xbf16>
    %c0_23 = arith.constant 0 : index
    %c0_24 = arith.constant 0 : index
    %26 = vector.load %arg12[%c0_23, %c0_24] : memref<16x32xbf16, #tpu.memory_space<vmem>>, vector<16x32xbf16>
    tpu.vector_store %arg12[%c0_23, %c0_24], %25 {strides = array<i32>} : memref<16x32xbf16, #tpu.memory_space<vmem>>, vector<16x32xbf16>,
    return
  }
  func.func @transform_0(%arg0: i32) -> (i32, i32) {
    %c0_i32 = arith.constant 0 : i32
    %c0_i32_0 = arith.constant 0 : i32
    return %arg0, %c0_i32 : i32, i32
  }
  func.func @transform_1(%arg0: i32) -> (i32, i32) {
    %c0_i32 = arith.constant 0 : i32
    %c0_i32_0 = arith.constant 0 : i32
    return %arg0, %c0_i32 : i32, i32
  }
  func.func @transform_2(%arg0: i32) -> (i32, i32) {
    %c0_i32 = arith.constant 0 : i32
    %c0_i32_0 = arith.constant 0 : i32
    return %arg0, %c0_i32 : i32, i32
  }
  func.func @transform_3(%arg0: i32) -> (i32, i32) {
    %c0_i32 = arith.constant 0 : i32
    %c0_i32_0 = arith.constant 0 : i32
    %c0_i32_1 = arith.constant 0 : i32
    return %c0_i32, %c0_i32_0 : i32, i32
  }
  func.func @transform_4(%arg0: i32) -> (i32, i32) {
    %c0_i32 = arith.constant 0 : i32
    %c0_i32_0 = arith.constant 0 : i32
    %c0_i32_1 = arith.constant 0 : i32
    return %c0_i32, %c0_i32_0 : i32, i32
  }
  func.func @transform_5(%arg0: i32) -> (i32, i32) {
    %c0_i32 = arith.constant 0 : i32
    %c0_i32_0 = arith.constant 0 : i32
    %c0_i32_1 = arith.constant 0 : i32
    return %c0_i32, %c0_i32_0 : i32, i32
  }
  func.func @transform_6(%arg0: i32) -> (i32, i32) {
    %c0_i32 = arith.constant 0 : i32
    %c0_i32_0 = arith.constant 0 : i32
    %c0_i32_1 = arith.constant 0 : i32
    return %c0_i32, %c0_i32_0 : i32, i32
  }
  func.func @transform_7(%arg0: i32) -> (i32, i32) {
    %c0_i32 = arith.constant 0 : i32
    %c0_i32_0 = arith.constant 0 : i32
    %c0_i32_1 = arith.constant 0 : i32
    return %c0_i32, %c0_i32_0 : i32, i32
  }
  func.func @transform_8(%arg0: i32) -> (i32, i32) {
    %c0_i32 = arith.constant 0 : i32
    %c0_i32_0 = arith.constant 0 : i32
    %c0_i32_1 = arith.constant 0 : i32
    return %c0_i32, %c0_i32_0 : i32, i32
  }
  func.func @transform_9(%arg0: i32) -> (i32, i32) {
    %c0_i32 = arith.constant 0 : i32
    %c0_i32_0 = arith.constant 0 : i32
    return %arg0, %c0_i32 : i32, i32
  }
  func.func @transform_10(%arg0: i32) -> (i32, i32) {
    %c0_i32 = arith.constant 0 : i32
    %c0_i32_0 = arith.constant 0 : i32
    return %arg0, %c0_i32 : i32, i32
  }
  func.func @transform_11(%arg0: i32) -> (i32, i32) {
    %c0_i32 = arith.constant 0 : i32
    %c0_i32_0 = arith.constant 0 : i32
    return %arg0, %c0_i32 : i32, i32
  }
}

</mosaic_0001>

<bundles_post_ra>
// kernel: tpu_custom_call.1
= control target key start
LH: loop header
LB: loop body
LE: loop exit
PB: predicated region body
PF: predicated region fallthrough
CT: control target
= control target key end

     0   :  { %17 = vsyncpa [#allocation3], 0  ;;  %s900_s0 = inlined_call_operand.hbm [shape: f32[16,32], index: 0, kind: input, shape index: {}]   ;;  %s901_s1 = inlined_call_operand.hbm [shape: f32[16,32], index: 1, kind: input, shape index: {}]   ;;  %s902_s2 = inlined_call_operand.hbm [shape: f32[16,32], index: 2, kind: input, shape index: {}]   ;;  %s903_s3 = inlined_call_operand.hbm [shape: bf16[32,32], index: 3, kind: input, shape index: {}]   ;;  %s904_s4 = inlined_call_operand.hbm [shape: bf16[32,32], index: 4, kind: input, shape index: {}]   ;;  %s905_s5 = inlined_call_operand.vmem [shape: bf16[32,32], index: 5, kind: input, shape index: {}]   ;;  %s906_s6 = inlined_call_operand.vmem [shape: f32[1,32], index: 6, kind: input, shape index: {}]   ;;  %s907_s7 = inlined_call_operand.vmem [shape: f32[1,32], index: 7, kind: input, shape index: {}]   ;;  %s908_s8 = inlined_call_operand.vmem [shape: f32[1,32], index: 8, kind: input, shape index: {}]   ;;  %s909_s9 = inlined_call_operand.hbm [shape: bf16[16,32], index: 9, kind: output, shape index: {0}]   ;;  %s910_s10 = inlined_call_operand.hbm [shape: bf16[16,32], index: 10, kind: output, shape index: {1}]   ;;  %s911_s11 = inlined_call_operand.hbm [shape: bf16[16,32], index: 11, kind: output, shape index: {2}]  }
   0x1   :  { %18 = vsyncpa [#allocation6], 0 }
   0x2   :  { %19 = vsyncpa [#allocation9], 0 }
   0x3   :  { %20 = vsyncpa [#allocation4], 0 }
   0x4   :  { %21 = vsyncpa [#allocation13], 0  ;;  %s661_s17 = smov [#allocation5]   ;;  %s662_s19 = smov [#allocation8]  }
   0x5   :  { %s39_s18 = sshll.u32 %s661_s17, 4  ;;  %s63_s20 = sshll.u32 %s662_s19, 4  ;;  %s40_s18 = int_to_ptr.vmem [resolvable:$true] %s39_s18  ;;  %s735_s20 = int_to_ptr.vmem [resolvable:$true] %s63_s20 }
   0x6   :  { %s475_s23 = scalar_lea.hbm %s901_s1, 256 }
   0x7   :  { %p476_p0 = scmp.ne.s32.totalorder %s901_s1, %s475_s23  ;;  %p479_p1 = scmp.lt.u32.totalorder %s475_s23, %s901_s1 }
   0x9   :  { %p481_p2 = pnand %p479_p1, %p476_p0 }
   0xb   :  { %484 = shalt.err (!%p481_p2)
}
   0xc   :  { %s485_s28 = scalar_lea.vmem %s40_s18, 256  ;;  %p490_p4 = scmp.lt.s32.totalorder %s40_s18, %s40_s18 }
   0xd   :  { %p486_p3 = scmp.ne.s32.totalorder %s40_s18, %s485_s28  ;;  %p491_p5 = scmp.lt.s32.totalorder %s485_s28, %s485_s28 }
   0xf   :  { %p492_p6 = por %p491_p5, %p490_p4 }
  0x11   :  { %p493_p7 = pnand %p492_p6, %p486_p3 }
  0x13   :  { %496 = shalt.err (!%p493_p7)
}
  0x14   :  { %s663_s29 = smov 128   ;;  %s664_s30 = smov 8  }
  0x15   :  { %45 = dma.hbm_to_vmem [thread:$0]  %s901_s1, 256, %s40_s18, [#allocation6], %s663_s29, %s663_s29, %s664_s30  }
  0x16   :  { %s497_s16 = scalar_lea.hbm %s903_s3, 256 }
  0x17   :  { %p498_p8 = scmp.ne.s32.totalorder %s903_s3, %s497_s16  ;;  %p501_p9 = scmp.lt.u32.totalorder %s497_s16, %s903_s3 }
  0x19   :  { %p503_p10 = pnand %p501_p9, %p498_p8 }
  0x1b   :  { %506 = shalt.err (!%p503_p10)
}
  0x1c   :  { %s507_s23 = scalar_lea.vmem %s735_s20, 256  ;;  %p512_p12 = scmp.lt.s32.totalorder %s735_s20, %s735_s20 }
  0x1d   :  { %p508_p11 = scmp.ne.s32.totalorder %s735_s20, %s507_s23  ;;  %p513_p13 = scmp.lt.s32.totalorder %s507_s23, %s507_s23 }
  0x1f   :  { %p514_p0 = por %p513_p13, %p512_p12 }
  0x21   :  { %p515_p1 = pnand %p514_p0, %p508_p11 }
  0x23   :  { %518 = shalt.err (!%p515_p1)
}
  0x24   :  { %s665_s1 = smov 64   ;;  %s666_s18 = smov 4  }
  0x25   :  { %69 = dma.hbm_to_vmem [thread:$0]  %s903_s3, 256, %s735_s20, [#allocation9], %s665_s1, %s665_s1, %s666_s18  }
  0x26   :  { %s667_s26 = smov [#allocation2]   ;;  %s668_s28 = smov [#allocation7]  }
  0x27   :  { %s27_s27 = sshll.u32 %s667_s26, 4  ;;  %s51_s12 = sshll.u32 %s668_s28, 4  ;;  %s28_s27 = int_to_ptr.vmem [resolvable:$true] %s27_s27  ;;  %s772_s12 = int_to_ptr.vmem [resolvable:$true] %s51_s12 }
  0x28   :  { %s519_s15 = scalar_lea.hbm %s900_s0, 256 }
  0x29   :  { %p520_p2 = scmp.ne.s32.totalorder %s900_s0, %s519_s15  ;;  %p523_p3 = scmp.lt.u32.totalorder %s519_s15, %s900_s0 }
  0x2b   :  { %p525_p4 = pnand %p523_p3, %p520_p2 }
  0x2d   :  { %528 = shalt.err (!%p525_p4)
}
  0x2e   :  { %s529_s3 = scalar_lea.vmem %s28_s27, 256  ;;  %p534_p6 = scmp.lt.s32.totalorder %s28_s27, %s28_s27 }
  0x2f   :  { %p530_p5 = scmp.ne.s32.totalorder %s28_s27, %s529_s3  ;;  %p535_p7 = scmp.lt.s32.totalorder %s529_s3, %s529_s3 }
  0x31   :  { %p536_p8 = por %p535_p7, %p534_p6 }
  0x33   :  { %p537_p9 = pnand %p536_p8, %p530_p5 }
  0x35   :  { %540 = shalt.err (!%p537_p9)
}
  0x36   :  { %33 = dma.hbm_to_vmem [thread:$0]  %s900_s0, 256, %s28_s27, [#allocation3], %s663_s29, %s663_s29, %s664_s30  }
  0x37   :  { %s541_s25 = scalar_lea.hbm %s902_s2, 256 }
  0x38   :  { %p542_p10 = scmp.ne.s32.totalorder %s902_s2, %s541_s25  ;;  %p545_p11 = scmp.lt.u32.totalorder %s541_s25, %s902_s2 }
  0x3a   :  { %p547_p12 = pnand %p545_p11, %p542_p10 }
  0x3c   :  { %550 = shalt.err (!%p547_p12)
}
  0x3d   :  { %s551_s15 = scalar_lea.vmem %s772_s12, 256  ;;  %p556_p0 = scmp.lt.s32.totalorder %s772_s12, %s772_s12 }
  0x3e   :  { %p552_p13 = scmp.ne.s32.totalorder %s772_s12, %s551_s15  ;;  %p557_p1 = scmp.lt.s32.totalorder %s551_s15, %s551_s15 }
  0x40   :  { %p558_p2 = por %p557_p1, %p556_p0 }
  0x42   :  { %p559_p3 = pnand %p558_p2, %p552_p13 }
  0x44   :  { %562 = shalt.err (!%p559_p3)
}
  0x45   :  { %57 = dma.hbm_to_vmem [thread:$0]  %s902_s2, 256, %s772_s12, [#allocation6], %s663_s29, %s663_s29, %s664_s30  }
  0x46   :  { %s669_s16 = smov [#allocation10]   ;;  %s563_s3 = scalar_lea.hbm %s904_s4, 256 }
  0x47   :  { %s75_s17 = sshll.u32 %s669_s16, 4  ;;  %p564_p4 = scmp.ne.s32.totalorder %s904_s4, %s563_s3  ;;  %s76_s17 = int_to_ptr.vmem [resolvable:$true] %s75_s17 }
  0x48   :  { %p567_p5 = scmp.lt.u32.totalorder %s563_s3, %s904_s4 }
  0x4a   :  { %p569_p6 = pnand %p567_p5, %p564_p4 }
  0x4c   :  { %572 = shalt.err (!%p569_p6)
}
  0x4d   :  { %s573_s25 = scalar_lea.vmem %s76_s17, 256  ;;  %p578_p8 = scmp.lt.s32.totalorder %s76_s17, %s76_s17 }
  0x4e   :  { %p574_p7 = scmp.ne.s32.totalorder %s76_s17, %s573_s25  ;;  %p579_p9 = scmp.lt.s32.totalorder %s573_s25, %s573_s25 }
  0x50   :  { %p580_p10 = por %p579_p9, %p578_p8 }
  0x52   :  { %p581_p11 = pnand %p580_p10, %p574_p7 }
  0x54   :  { %584 = shalt.err (!%p581_p11)
}
  0x55   :  { %81 = dma.hbm_to_vmem [thread:$0]  %s904_s4, 256, %s76_s17, [#allocation9], %s665_s1, %s665_s1, %s666_s18  }
  0x56   :  { %651 = dma.done.wait [#allocation3], 256  }
  0x57   :  { %652 = vsyncadd [#allocation3], 4294967040 }
  0x58   :  { %653 = dma.done.wait [#allocation6], 512  }
  0x59   :  { %654 = vsyncadd [#allocation6], 4294966784 }
  0x5a   :  { %655 = dma.done.wait [#allocation9], 512  }
  0x5b   :  { %656 = vsyncadd [#allocation9], 4294966784  ;;  %v670_v0 = vmov 0.0   ;;  %vm671_vm0 = vmmov 0   ;;  %v469_v1 = vld [vmem:[#allocation8] sm:$0xff]   ;;  %v470_v2 = vld [vmem:[#allocation8 + $0x8] sm:$0xff]  }
  0x5c   :  { %431 = vmatprep.subr.bf16.mxu0 %v670_v0  ;;  %439 = vmatprep.subr.bf16.mxu1 %v670_v0  ;;  %v471_v3 = vld [vmem:[#allocation10] sm:$0xff]   ;;  %v107_v5 = vld [vmem:[#allocation2 + $0x8] sm:$0xff]  ;;  %v109_v9 = vld [vmem:[#allocation5] sm:$0xff]  ;;  %vm138_vm1 = vcmask 261120   ;;  %vm191_vm2 = vcmask 257024   ;;  %s673_s27 = smov [#allocation12]  }
  0x5d   :  { %435 = vmatprep.mubr.msk.bf16.mxu0 %vm671_vm0, %v670_v0  ;;  %443 = vmatprep.mubr.msk.bf16.mxu1 %vm671_vm0, %v670_v0  ;;  %v106_v4 = vld [vmem:[#allocation2] sm:$0xff]  ;;  %v473_v8 = vld [vmem:[#allocation10 + $0x8] sm:$0xff]   ;;  %v110_v10 = vld [vmem:[#allocation5 + $0x8] sm:$0xff] }
  0x5e   :  { %432 = vmatpush3.bf16.msra.mxu0 %v469_v1  ;;  %440 = vmatpush3.bf16.msra.mxu1 %v471_v3  ;;  %v472_v6 = vld [vmem:[%s905_s5] sm:$0xff]   ;;  %v108_v7 = vpack.c.bf16 %v107_v5, %v106_v4  ;;  %v111_v11 = vpack.c.bf16 %v110_v10, %v109_v9  ;;  %v474_v12 = vld [vmem:[%s905_s5 + $0x8] sm:$0xff]   ;;  %s672_s5 = smov [#allocation11]  }
  0x5f   :  { %433 = vmatprep.subr.bf16.mxu0 %v670_v0  ;;  %441 = vmatprep.subr.bf16.mxu1 %v670_v0  ;;  %v112_v13 = vld [vmem:[#allocation7] sm:$0xff]  ;;  %v113_v14 = vld [vmem:[#allocation7 + $0x8] sm:$0xff]  ;;  %s353_s0 = sshll.u32 %s672_s5, 4  ;;  %s354_s0 = int_to_ptr.vmem [resolvable:$true] %s353_s0 }
  0x60   :  { %v114_v15 = vpack.c.bf16 %v113_v14, %v112_v13  ;;  %v398_v16 = vld [vmem:[%s906_s6] ss:$0 sm:$0xff]  ;;  %s365_s6 = sshll.u32 %s673_s27, 4  ;;  %s585_s17 = scalar_lea.vmem %s354_s0, 128  ;;  %s845_s6 = int_to_ptr.vmem [resolvable:$true] %s365_s6 }
  0x61   :  { %v404_v18 = vld [vmem:[%s907_s7] ss:$0 sm:$0xff]  ;;  %p586_p12 = scmp.ne.s32.totalorder %s354_s0, %s585_s17  ;;  %p590_p13 = scmp.lt.s32.totalorder %s354_s0, %s354_s0 }
  0x62   :  { %434 = vmatpush3.bf16.msra.mxu0 %v470_v2  ;;  %442 = vmatpush3.bf16.msra.mxu1 %v473_v8  ;;  %v410_v33 = vld [vmem:[%s908_s8] ss:$0 sm:$0xff]  ;;  %p591_p0 = scmp.lt.s32.totalorder %s585_s17, %s585_s17 }
  0x63   :  { %447 = vmatprep.subr.bf16.mxu0 %v670_v0 }
  0x64   :  { %p592_p1 = por %p591_p0, %p590_p13 }
  0x65   :  { %436 = vmatmul.mubr.msk.bf16.vlgmr.msra.gmra.mrb[0].mxu0 %vm138_vm1, %v108_v7  ;;  %444 = vmatmul.mubr.msk.bf16.vlgmr.msra.gmra.mrb[0].mxu1 %vm138_vm1, %v111_v11 }
  0x66   :  { %448 = vmatpush3.bf16.msra.mxu0 %v472_v6  ;;  %451 = vmatprep.mubr.msk.bf16.mxu0 %vm671_vm0, %v670_v0  ;;  %p593_p2 = pnand %p592_p1, %p586_p12 }
  0x67   :  { %449 = vmatprep.subr.bf16.mxu0 %v670_v0 }
  0x6a   :  { %450 = vmatpush3.bf16.msra.mxu0 %v474_v12 }
  0x6d   :  { %452 = vmatmul.mubr.msk.bf16.vlgmr.msra.gmra.mrb[4].mxu0 %vm138_vm1, %v114_v15 }
 0x138   :  { %v176_v17 = vpop.f32.mrb[0].mxu0  ;;  %v254_v22 = vpop.f32.mrb[0].mxu1 }
 0x139   :  { %v177_v19 = vadd.f32 %v398_v16, %v176_v17  ;;  %v437_v20 = vpop.f32.mrb[1].mxu0  ;;  %v255_v26 = vadd.f32 %v404_v18, %v254_v22  ;;  %v445_v27 = vpop.f32.mrb[1].mxu1 }
 0x13a   :  { %v179_v21 = vpop.f32.mrb[2].mxu0  ;;  %v257_v28 = vpop.f32.mrb[2].mxu1 }
 0x13b   :  { %v416_v23 = vpack.c.bf16 %v177_v19, %v177_v19  ;;  %v180_v24 = vadd.f32 %v398_v16, %v179_v21  ;;  %v438_v25 = vpop.f32.mrb[3].mxu0  ;;  %v418_v30 = vpack.c.bf16 %v255_v26, %v255_v26  ;;  %v258_v31 = vadd.f32 %v404_v18, %v257_v28  ;;  %v446_v32 = vpop.f32.mrb[3].mxu1 }
 0x13d   :  { %v417_v29 = vpack.c.bf16 %v180_v24, %v180_v24  ;;  %192 = vst.msk [vmem:[#allocation11] sm:$0xf] %vm191_vm2, %v416_v23  ;;  %v419_v34 = vpack.c.bf16 %v258_v31, %v258_v31  ;;  %269 = vst.msk [vmem:[#allocation12] sm:$0xf] %vm191_vm2, %v418_v30 }
 0x13f   :  { %193 = vst.msk [vmem:[#allocation11 + $0x4] sm:$0xf] %vm191_vm2, %v417_v29 }
 0x140   :  { %v331_v35 = vpop.f32.mrb[4].mxu0 }
 0x141   :  { %596 = shalt.err (!%p593_p2)
}
 0x142   :  { %s597_s3 = scalar_lea.hbm %s909_s9, 128 }
 0x143   :  { %p598_p3 = scmp.ne.s32.totalorder %s909_s9, %s597_s3  ;;  %p601_p4 = scmp.lt.u32.totalorder %s597_s3, %s909_s9 }
 0x145   :  { %p603_p5 = pnand %p601_p4, %p598_p3 }
 0x147   :  { %606 = shalt.err (!%p603_p5)
}
 0x148   :  { %359 = dma.vmem_to_hbm [thread:$0]  %s354_s0, 128, %s909_s9, [#allocation4], %s665_s1, %s665_s1, %s666_s18   ;;  %v332_v36 = vadd.f32 %v410_v33, %v331_v35  ;;  %270 = vst.msk [vmem:[#allocation12 + $0x4] sm:$0xf] %vm191_vm2, %v419_v34  ;;  %v453_v37 = vpop.f32.mrb[5].mxu0 }
 0x149   :  { %s674_s2 = smov [#allocation14]   ;;  %v334_v38 = vpop.f32.mrb[6].mxu0  ;;  %s607_s4 = scalar_lea.vmem %s845_s6, 128 }
 0x14a   :  { %s377_s29 = sshll.u32 %s674_s2, 4  ;;  %p608_p6 = scmp.ne.s32.totalorder %s845_s6, %s607_s4  ;;  %s378_s29 = int_to_ptr.vmem [resolvable:$true] %s377_s29 }
 0x14b   :  { %p612_p7 = scmp.lt.s32.totalorder %s845_s6, %s845_s6  ;;  %p613_p8 = scmp.lt.s32.totalorder %s607_s4, %s607_s4 }
 0x14d   :  { %p614_p9 = por %p613_p8, %p612_p7 }
 0x14f   :  { %p615_p10 = pnand %p614_p9, %p608_p6 }
 0x151   :  { %618 = shalt.err (!%p615_p10)
}
 0x152   :  { %s619_s26 = scalar_lea.hbm %s910_s10, 128 }
 0x153   :  { %p620_p11 = scmp.ne.s32.totalorder %s910_s10, %s619_s26  ;;  %p623_p12 = scmp.lt.u32.totalorder %s619_s26, %s910_s10 }
 0x155   :  { %p625_p13 = pnand %p623_p12, %p620_p11 }
 0x157   :  { %628 = shalt.err (!%p625_p13)
}
 0x158   :  { %371 = dma.vmem_to_hbm [thread:$0]  %s845_s6, 128, %s910_s10, [#allocation13], %s665_s1, %s665_s1, %s666_s18   ;;  %v420_v39 = vpack.c.bf16 %v332_v36, %v332_v36  ;;  %v335_v40 = vadd.f32 %v410_v33, %v334_v38  ;;  %v454_v41 = vpop.f32.mrb[7].mxu0 }
 0x159   :  { %s629_s0 = scalar_lea.vmem %s378_s29, 128  ;;  %p634_p1 = scmp.lt.s32.totalorder %s378_s29, %s378_s29 }
 0x15a   :  { %346 = vst.msk [vmem:[#allocation14] sm:$0xf] %vm191_vm2, %v420_v39  ;;  %v421_v42 = vpack.c.bf16 %v335_v40, %v335_v40  ;;  %p630_p0 = scmp.ne.s32.totalorder %s378_s29, %s629_s0  ;;  %p635_p2 = scmp.lt.s32.totalorder %s629_s0, %s629_s0 }
 0x15c   :  { %347 = vst.msk [vmem:[#allocation14 + $0x4] sm:$0xf] %vm191_vm2, %v421_v42  ;;  %p636_p3 = por %p635_p2, %p634_p1 }
 0x15e   :  { %p637_p4 = pnand %p636_p3, %p630_p0 }
 0x160   :  { %640 = shalt.err (!%p637_p4)
}
 0x161   :  { %s641_s10 = scalar_lea.hbm %s911_s11, 128 }
 0x162   :  { %p642_p5 = scmp.ne.s32.totalorder %s911_s11, %s641_s10  ;;  %p645_p6 = scmp.lt.u32.totalorder %s641_s10, %s911_s11 }
 0x164   :  { %p647_p7 = pnand %p645_p6, %p642_p5 }
 0x166   :  { %650 = shalt.err (!%p647_p7)
}
 0x167   :  { %383 = dma.vmem_to_hbm [thread:$0]  %s378_s29, 128, %s911_s11, [#allocation13], %s665_s1, %s665_s1, %s666_s18  }
 0x168   :  { %657 = dma.done.wait [#allocation4], 128  }
 0x169   :  { %658 = vsyncadd [#allocation4], 4294967168 }
 0x16a   :  { %659 = dma.done.wait [#allocation13], 256  }
 0x16b   :  { %660 = vsyncadd [#allocation13], 4294967040 }
 0x16c   :  { %393 = vsyncpa [#allocation3], 1 }
 0x16d   :  { %394 = vsyncpa [#allocation6], 1 }
 0x16e   :  { %395 = vsyncpa [#allocation9], 1 }
 0x16f   :  { %396 = vsyncpa [#allocation4], 1 }
 0x170   :  { %397 = vsyncpa [#allocation13], 1 }

</bundles_post_ra>
